<compile_context>
chip_gen: v6e
topology: v6e:2x2x1
jax: 0.10.0
libtpu: 0.0.40
codegen_flags: <defaults>
</compile_context>

<pallas_src>
import jax
import jax.numpy as jnp
from jax.experimental import pallas as pl
from jax.experimental.pallas import tpu as pltpu


def _cls_pool_kernel(x_ref, o_ref):
    # x_ref: (Bt, W) VMEM tile = first W columns of each (S*H)-long row, i.e.
    #        the CLS token (cols 0:H) plus lane-alignment padding columns.
    # o_ref: (Bt, H) VMEM tile.
    h = o_ref.shape[-1]
    o_ref[...] = x_ref[:, :h]


def _round_up(x, m):
    return ((x + m - 1) // m) * m


def cls_pooling(last_hidden_state, attention_mask=None):
    """Pallas equivalent of CLSPooling.forward: last_hidden_state[:, 0, :]."""
    del attention_mask  # CLS pooling ignores the mask (kept for signature parity).
    B, S, H = last_hidden_state.shape
    dtype = last_hidden_state.dtype
    itemsize = jnp.dtype(dtype).itemsize

    # Free row-major reshape: row b = [tok0 | tok1 | ...]; CLS token = cols 0:H.
    x2 = last_hidden_state.reshape(B, S * H)

    # Input block width: lane-aligned (x128) cover of the CLS token, clamped to
    # the full row when the row itself is shorter (then it's a full-extent block).
    W = min(_round_up(H, 128), S * H)

    # Sublane multiple per dtype packing: f32 -> 8, bf16/f16 -> 16, i8/fp8 -> 32.
    if itemsize >= 4:
        m = 8
    elif itemsize == 2:
        m = 16
    else:
        m = 32

    IN_BUFS = 3    # 3-deep input pipelining (strided gather is latency-bound)
    OUT_BUFS = 2   # default output double-buffering
    # Per-core VMEM budget, conservative across generations: v5e 16 MiB scoped
    # default, v6e/v7x 32 MiB scoped; v7x 64 MiB physical shared by 2 cores
    # that both run grid steps under dimension_semantics=("parallel",).
    VMEM_BUDGET = 12 * 1024 * 1024

    bytes_per_batch_row = (IN_BUFS * W + OUT_BUFS * H) * itemsize
    bt_budget = max(m, (VMEM_BUDGET // bytes_per_batch_row) // m * m)

    if B <= m:
        # Tiny batch: full-extent first dim is always layout-legal; one step.
        Bt = B
    else:
        Bt = min(bt_budget, _round_up(B, m))
        # Keep >= 2 grid steps so DMA/store overlap and both v7x TensorCores
        # get work (harmless no-op on single-core v5e/v6e).
        Bt = min(Bt, _round_up(-(-B // 2), m))

    num_steps = pl.cdiv(B, Bt)

    if num_steps > 1:
        in_spec = pl.BlockSpec(
            (Bt, W), lambda i: (i, 0), pipeline_mode=pl.Buffered(IN_BUFS)
        )
    else:
        in_spec = pl.BlockSpec((Bt, W), lambda i: (i, 0))

    return pl.pallas_call(
        _cls_pool_kernel,
        out_shape=jax.ShapeDtypeStruct((B, H), dtype),
        grid=(num_steps,),
        in_specs=[in_spec],
        out_specs=pl.BlockSpec((Bt, H), lambda i: (i, 0)),
        compiler_params=pltpu.CompilerParams(
            dimension_semantics=("parallel",),
        ),
    )(x2)


if __name__ == "__main__":
    key = jax.random.PRNGKey(0)
    k1, k2, k3 = jax.random.split(key, 3)

    # Case 1: tiny BERT-like shape (H multiple of 128) -> single full-extent block.
    B, S, H = 2, 8, 128
    last_hidden_state = jax.random.normal(k1, (B, S, H), dtype=jnp.float32)
    attention_mask = jnp.ones((B, S), dtype=jnp.int32)
    out = jax.block_until_ready(cls_pooling(last_hidden_state, attention_mask))
    assert out.shape == (B, H)
    assert out.dtype == last_hidden_state.dtype
    assert jnp.allclose(out, last_hidden_state[:, 0, :])

    # Case 2: tiled batch (grid=2, Buffered input) + non-128-multiple hidden dim.
    B2, S2, H2 = 16, 8, 96
    x2 = jax.random.normal(k2, (B2, S2, H2), dtype=jnp.float32)
    out2 = jax.block_until_ready(cls_pooling(x2, jnp.ones((B2, S2), jnp.int32)))
    assert out2.shape == (B2, H2)
    assert jnp.allclose(out2, x2[:, 0, :])

    # Case 3: bf16 (sublane multiple 16) + ragged last batch block.
    B3, S3, H3 = 20, 4, 64
    x3 = jax.random.normal(k3, (B3, S3, H3), dtype=jnp.bfloat16)
    out3 = jax.block_until_ready(cls_pooling(x3, jnp.ones((B3, S3), jnp.int32)))
    assert out3.shape == (B3, H3)
    assert out3.dtype == jnp.bfloat16
    assert jnp.array_equal(out3, x3[:, 0, :])

    print("KERNEL_OK")
</pallas_src>

<mosaic_0001>
module attributes {stable_mosaic.version = 11 : i64} {
  func.func @_cls_pool_kernel(%arg0: i32, %arg1: memref<2x128xf32, #tpu.memory_space<vmem>>, %arg2: memref<2x128xf32, #tpu.memory_space<vmem>>) attributes {dimension_semantics = [#tpu.dimension_semantics<parallel>], iteration_bounds = array<i64: 1>, scalar_prefetch = 0 : i64, scratch_operands = 0 : i64, tpu.core_type = #tpu.core_type<tc>, window_params = [{transform_indices = @transform_0, window_bounds = array<i64: 2, 128>}, {transform_indices = @transform_1, window_bounds = array<i64: 2, 128>}]} {
    %c0 = arith.constant 0 : index
    %c0_0 = arith.constant 0 : index
    %0 = vector.load %arg1[%c0, %c0_0] : memref<2x128xf32, #tpu.memory_space<vmem>>, vector<2x128xf32>
    %c0_1 = arith.constant 0 : index
    %c0_2 = arith.constant 0 : index
    %1 = vector.load %arg2[%c0_1, %c0_2] : memref<2x128xf32, #tpu.memory_space<vmem>>, vector<2x128xf32>
    tpu.vector_store %arg2[%c0_1, %c0_2], %0 {strides = array<i32>} : memref<2x128xf32, #tpu.memory_space<vmem>>, vector<2x128xf32>,
    return
  }
  func.func @transform_0(%arg0: i32) -> (i32, i32) {
    %c0_i32 = arith.constant 0 : i32
    %c0_i32_0 = arith.constant 0 : i32
    return %arg0, %c0_i32 : i32, i32
  }
  func.func @transform_1(%arg0: i32) -> (i32, i32) {
    %c0_i32 = arith.constant 0 : i32
    %c0_i32_0 = arith.constant 0 : i32
    return %arg0, %c0_i32 : i32, i32
  }
}

</mosaic_0001>

<bundles_post_ra>
// kernel: tpu_custom_call.1
= control target key start
LH: loop header
LB: loop body
LE: loop exit
PB: predicated region body
PF: predicated region fallthrough
CT: control target
= control target key end

     0   :  { %6 = vsyncpa [#allocation3], 0  ;;  %s102_s0 = inlined_call_operand.hbm [shape: f32[2,1024], index: 0, kind: input, shape index: {}]   ;;  %s103_s1 = inlined_call_operand.hbm [shape: f32[2,128], index: 1, kind: output, shape index: {}]  }
   0x1   :  { %7 = vsyncpa [#allocation4], 0  ;;  %s84_s6 = smov [#allocation2]  }
   0x2   :  { %s14_s7 = sshll.u32 %s84_s6, 4  ;;  %s15_s7 = int_to_ptr.vmem [resolvable:$true] %s14_s7 }
   0x3   :  { %s48_s8 = scalar_lea.vmem %s15_s7, 32  ;;  %p53_p1 = scmp.lt.s32.totalorder %s15_s7, %s15_s7 }
   0x4   :  { %p49_p0 = scmp.ne.s32.totalorder %s15_s7, %s48_s8  ;;  %p54_p2 = scmp.lt.s32.totalorder %s48_s8, %s48_s8 }
   0x6   :  { %p55_p3 = por %p54_p2, %p53_p1 }
   0x8   :  { %p56_p4 = pnand %p55_p3, %p49_p0 }
   0xa   :  { %59 = shalt.err (!%p56_p4)
}
   0xb   :  { %17 = dma.hbm_to_vmem [thread:$0]  %s102_s0, 32, %s15_s7, [#allocation3]  }
   0xc   :  { %80 = dma.done.wait [#allocation3], 32  }
   0xd   :  { %81 = vsyncadd [#allocation3], 4294967264  ;;  %s85_s11 = smov [#allocation5]   ;;  %v21_v0 = vld [vmem:[#allocation2] sm:$0x3] }
   0xe   :  { %s29_s12 = sshll.u32 %s85_s11, 4  ;;  %22 = vst [vmem:[#allocation5] sm:$0x3] %v21_v0  ;;  %s30_s12 = int_to_ptr.vmem [resolvable:$true] %s29_s12 }
   0xf   :  { %s60_s13 = scalar_lea.vmem %s30_s12, 32  ;;  %p65_p6 = scmp.lt.s32.totalorder %s30_s12, %s30_s12 }
  0x10   :  { %p61_p5 = scmp.ne.s32.totalorder %s30_s12, %s60_s13  ;;  %p66_p7 = scmp.lt.s32.totalorder %s60_s13, %s60_s13 }
  0x12   :  { %p67_p8 = por %p66_p7, %p65_p6 }
  0x14   :  { %p68_p9 = pnand %p67_p8, %p61_p5 }
  0x16   :  { %71 = shalt.err (!%p68_p9)
}
  0x17   :  { %32 = dma.vmem_to_hbm [thread:$0]  %s30_s12, 32, %s103_s1, [#allocation4]  }
  0x18   :  { %82 = dma.done.wait [#allocation4], 32  }
  0x19   :  { %83 = vsyncadd [#allocation4], 4294967264 }
  0x1a   :  { %36 = vsyncpa [#allocation3], 1 }
  0x1b   :  { %37 = vsyncpa [#allocation4], 1 }

</bundles_post_ra>
